<compile_context>
chip_gen: v6e
topology: v6e:2x2x1
jax: 0.10.0
libtpu: 0.0.40
codegen_flags: <defaults>
</compile_context>

<pallas_src>
import functools

import jax
import jax.numpy as jnp
from jax.experimental import pallas as pl
from jax.experimental.pallas import tpu as pltpu


def _channel_attention_kernel(x_ref, wexp_ref, pool_ref, b_ref, o_ref, acc_ref, *,
                              hw, chunk, rows, row_tile,
                              needs_col_mask, needs_row_mask):
    k = pl.program_id(1)
    nk = pl.num_programs(1)

    @pl.when(k == 0)
    def _init():
        acc_ref[...] = jnp.zeros_like(acc_ref)

    # x_ref: (row_tile, chunk) — lane-dense slice of the flattened (N*C, H*W) array.
    x = x_ref[...].astype(jnp.float32)

    if needs_col_mask:
        # Steady-state chunks: pure load + add (no per-chunk masking work).
        @pl.when(k < nk - 1)
        def _acc_body():
            acc_ref[...] += jnp.sum(x, axis=-1, keepdims=True)

        # Tail chunk only: zero out-of-bounds lanes before accumulating.
        @pl.when(k == nk - 1)
        def _acc_tail():
            cols = k * chunk + jax.lax.broadcasted_iota(jnp.int32, x.shape, 1)
            acc_ref[...] += jnp.sum(jnp.where(cols < hw, x, 0.0),
                                    axis=-1, keepdims=True)
    else:
        acc_ref[...] += jnp.sum(x, axis=-1, keepdims=True)

    @pl.when(k == nk - 1)
    def _finalize():
        s = acc_ref[...]                                    # (row_tile, 1) f32 sums
        if needs_row_mask:
            # Last row tile may extend past N*C rows: zero garbage rows so they
            # cannot contaminate the pooling matmul (0 * finite stays 0).
            r0 = pl.program_id(0) * row_tile
            rids = r0 + jax.lax.broadcasted_iota(jnp.int32, s.shape, 0)
            s = jnp.where(rids < rows, s, 0.0)
        # mean -> per-row scale by the folded weight -> pool channels per batch.
        scaled = (s * (1.0 / hw)) * wexp_ref[...]           # (row_tile, C)
        out = jnp.dot(pool_ref[...], scaled,
                      preferred_element_type=jnp.float32) + b_ref[...]
        o_ref[...] = jax.nn.sigmoid(out).astype(o_ref.dtype)


def channel_attention(x, w1, b1, w2, b2, *, target_tile_bytes=None):
    """x: (N, C, H, W); w1, w2: (C, C); b1, b2: (C,). Returns (N, C, 1, 1)."""
    N, C, H, W = x.shape
    HW = H * W
    R = N * C
    itemsize = jnp.dtype(x.dtype).itemsize

    # --- generation-aware budgets: bigger tiles on 128 MiB parts, capped on 64 MiB v7x.
    try:
        vmem_cap = int(pltpu.get_tpu_info().vmem_capacity_bytes)
    except Exception:
        vmem_cap = 64 * 1024 * 1024  # conservative fallback
    if target_tile_bytes is None:
        target_tile_bytes = (8 << 20) if vmem_cap >= (96 << 20) else (4 << 20)

    # --- row tiling: whole batches per tile, 8*C-aligned so blocks stay (8,128)-legal
    # and the (nb, C) output block keeps an 8-aligned sublane count when tiled.
    row_unit = 8 * C
    row_tile_cap = max(row_unit, (512 // row_unit) * row_unit)
    row_tile = R if R <= row_tile_cap else row_tile_cap
    grid_r = -(-R // row_tile)
    needs_row_mask = (grid_r * row_tile != R)
    nb = row_tile // C  # whole batches per row tile

    # --- lane chunk along H*W (multiple of 128, or the full extent for small inputs).
    max_chunk = max(128, (target_tile_bytes // max(1, row_tile * itemsize)) // 128 * 128)
    if HW <= max_chunk:
        chunk, grid_k = HW, 1
    else:
        chunk, grid_k = max_chunk, -(-HW // max_chunk)
    needs_col_mask = (chunk * grid_k != HW)

    # --- fold fc2(fc1(.)) into a single affine map (no activation between them).
    w1f = jnp.asarray(w1, jnp.float32)
    w2f = jnp.asarray(w2, jnp.float32)
    b1f = jnp.asarray(b1, jnp.float32)
    b2f = jnp.asarray(b2, jnp.float32)
    w_fold = w2f @ w1f                      # (C, C): y = avg @ w_fold.T + b_fold
    b_fold = b1f @ w2f.T + b2f              # (C,)

    # Finalize helper operands (tiny, host-precomputed; avoid in-kernel reshapes).
    wexp = jnp.tile(w_fold.T, (nb, 1))                               # (row_tile, C)
    pool = jnp.repeat(jnp.eye(nb, dtype=jnp.float32), C, axis=1)     # (nb, row_tile)
    b2d = b_fold.reshape(1, C)

    tile_bytes = row_tile * chunk * itemsize
    vmem_limit = int(min(vmem_cap - vmem_cap // 4,                   # <= 75% of capacity
                         max(32 << 20, 4 * tile_bytes + (4 << 20))))

    kernel = functools.partial(
        _channel_attention_kernel,
        hw=HW, chunk=chunk, rows=R, row_tile=row_tile,
        needs_col_mask=needs_col_mask, needs_row_mask=needs_row_mask)

    out = pl.pallas_call(
        kernel,
        out_shape=jax.ShapeDtypeStruct((N, C), x.dtype),
        grid=(grid_r, grid_k),
        in_specs=[
            pl.BlockSpec((row_tile, chunk), lambda i, k: (i, k)),
            pl.BlockSpec((row_tile, C), lambda i, k: (0, 0)),
            pl.BlockSpec((nb, row_tile), lambda i, k: (0, 0)),
            pl.BlockSpec((1, C), lambda i, k: (0, 0)),
        ],
        out_specs=pl.BlockSpec((nb, C), lambda i, k: (i, 0)),
        scratch_shapes=[pltpu.VMEM((row_tile, 1), jnp.float32)],
        compiler_params=pltpu.CompilerParams(
            dimension_semantics=("parallel", "arbitrary"),
            vmem_limit_bytes=vmem_limit,
        ),
    )(x.reshape(R, HW), wexp, pool, b2d)

    return out.reshape(N, C, 1, 1)


def _reference(x, w1, b1, w2, b2):
    avg = jnp.mean(x.astype(jnp.float32), axis=(2, 3))
    h = avg @ w1.T + b1
    out = h @ w2.T + b2
    return jax.nn.sigmoid(out).astype(x.dtype).reshape(x.shape[0], x.shape[1], 1, 1)


if __name__ == "__main__":
    key = jax.random.PRNGKey(0)

    # --- Test 1: module-sized input, single reduction step ---------------------
    N, C, H, W = 2, 4, 16, 16
    k_x, k_w1, k_b1, k_w2, k_b2, k_x2 = jax.random.split(key, 6)
    x = jax.random.normal(k_x, (N, C, H, W), dtype=jnp.float32)

    # nn.Linear-style init: U(-1/sqrt(C), 1/sqrt(C)).
    bound = 1.0 / float(jnp.sqrt(jnp.float32(C)))
    w1 = jax.random.uniform(k_w1, (C, C), jnp.float32, -bound, bound)
    b1 = jax.random.uniform(k_b1, (C,), jnp.float32, -bound, bound)
    w2 = jax.random.uniform(k_w2, (C, C), jnp.float32, -bound, bound)
    b2 = jax.random.uniform(k_b2, (C,), jnp.float32, -bound, bound)

    y = jax.block_until_ready(channel_attention(x, w1, b1, w2, b2))
    y_ref = _reference(x, w1, b1, w2, b2)
    assert y.shape == (N, C, 1, 1), y.shape
    assert jnp.allclose(y, y_ref, atol=1e-5, rtol=1e-5), "mismatch vs reference (test 1)"

    # --- Test 2: exercise the tiled + tail-masked reduction path (H*W not a
    # multiple of the chunk) by forcing a tiny per-step tile budget. ------------
    N2, C2, H2, W2 = 2, 4, 23, 61  # H*W = 1403, not a multiple of 128
    x2 = jax.random.normal(k_x2, (N2, C2, H2, W2), dtype=jnp.float32)
    y2 = jax.block_until_ready(
        channel_attention(x2, w1, b1, w2, b2,
                          target_tile_bytes=N2 * C2 * 4 * 128))
    y2_ref = _reference(x2, w1, b1, w2, b2)
    assert y2.shape == (N2, C2, 1, 1), y2.shape
    assert jnp.allclose(y2, y2_ref, atol=1e-5, rtol=1e-5), "mismatch vs reference (test 2)"

    print("KERNEL_OK")
</pallas_src>

<mosaic_0001>
module attributes {stable_mosaic.version = 11 : i64} {
  func.func @_channel_attention_kernel(%arg0: i32, %arg1: i32, %arg2: memref<8x256xf32, #tpu.memory_space<vmem>>, %arg3: memref<8x4xf32, #tpu.memory_space<vmem>>, %arg4: memref<2x8xf32, #tpu.memory_space<vmem>>, %arg5: memref<1x4xf32, #tpu.memory_space<vmem>>, %arg6: memref<2x4xf32, #tpu.memory_space<vmem>>, %arg7: memref<8x1xf32, #tpu.memory_space<vmem>>) attributes {dimension_semantics = [#tpu.dimension_semantics<parallel>, #tpu.dimension_semantics<arbitrary>], iteration_bounds = array<i64: 1, 1>, scalar_prefetch = 0 : i64, scratch_operands = 1 : i64, tpu.core_type = #tpu.core_type<tc>, window_params = [{transform_indices = @transform_0, window_bounds = array<i64: 8, 256>}, {pipeline_mode = #tpu.pipeline_mode<synchronous>, transform_indices = @transform_1, window_bounds = array<i64: 8, 4>}, {pipeline_mode = #tpu.pipeline_mode<synchronous>, transform_indices = @transform_2, window_bounds = array<i64: 2, 8>}, {pipeline_mode = #tpu.pipeline_mode<synchronous>, transform_indices = @transform_3, window_bounds = array<i64: 1, 4>}, {transform_indices = @transform_4, window_bounds = array<i64: 2, 4>}]} {
    %c0_i32 = arith.constant 0 : i32
    %0 = arith.cmpi eq, %arg1, %c0_i32 : i32
    %1 = arith.extui %0 : i1 to i32
    %c0_i32_0 = arith.constant 0 : i32
    %2 = arith.cmpi ne, %1, %c0_i32_0 : i32
    scf.if %2 {
      %cst_8 = arith.constant 0.000000e+00 : f32
      %12 = vector.broadcast %cst_8 : f32 to vector<8x1xf32>
      %c0_9 = arith.constant 0 : index
      %c0_10 = arith.constant 0 : index
      %13 = vector.load %arg7[%c0_9, %c0_10] : memref<8x1xf32, #tpu.memory_space<vmem>>, vector<8x1xf32>
      tpu.vector_store %arg7[%c0_9, %c0_10], %12 {strides = array<i32>} : memref<8x1xf32, #tpu.memory_space<vmem>>, vector<8x1xf32>,
    } else {
    }
    %c0 = arith.constant 0 : index
    %c0_1 = arith.constant 0 : index
    %3 = vector.load %arg2[%c0, %c0_1] : memref<8x256xf32, #tpu.memory_space<vmem>>, vector<8x256xf32>
    %c0_2 = arith.constant 0 : index
    %c0_3 = arith.constant 0 : index
    %4 = vector.load %arg7[%c0_2, %c0_3] : memref<8x1xf32, #tpu.memory_space<vmem>>, vector<8x1xf32>
    %cst = arith.constant dense<0.000000e+00> : vector<8xf32>
    %5 = vector.multi_reduction <add>, %3, %cst [1] : vector<8x256xf32> to vector<8xf32>
    %6 = vector.shape_cast %5 : vector<8xf32> to vector<8x1xf32>
    %7 = arith.addf %4, %6 : vector<8x1xf32>
    %c0_4 = arith.constant 0 : index
    %c0_5 = arith.constant 0 : index
    %8 = vector.load %arg7[%c0_4, %c0_5] : memref<8x1xf32, #tpu.memory_space<vmem>>, vector<8x1xf32>
    tpu.vector_store %arg7[%c0_4, %c0_5], %7 {strides = array<i32>} : memref<8x1xf32, #tpu.memory_space<vmem>>, vector<8x1xf32>,
    %c0_i32_6 = arith.constant 0 : i32
    %9 = arith.cmpi eq, %arg1, %c0_i32_6 : i32
    %10 = arith.extui %9 : i1 to i32
    %c0_i32_7 = arith.constant 0 : i32
    %11 = arith.cmpi ne, %10, %c0_i32_7 : i32
    scf.if %11 {
      %c0_8 = arith.constant 0 : index
      %c0_9 = arith.constant 0 : index
      %12 = vector.load %arg7[%c0_8, %c0_9] : memref<8x1xf32, #tpu.memory_space<vmem>>, vector<8x1xf32>
      %cst_10 = arith.constant 3.906250e-03 : f32
      %13 = vector.broadcast %cst_10 : f32 to vector<8x1xf32>
      %14 = arith.mulf %12, %13 : vector<8x1xf32>
      %c0_11 = arith.constant 0 : index
      %c0_12 = arith.constant 0 : index
      %15 = vector.load %arg3[%c0_11, %c0_12] : memref<8x4xf32, #tpu.memory_space<vmem>>, vector<8x4xf32>
      %16 = vector.broadcast %14 : vector<8x1xf32> to vector<8x4xf32>
      %17 = arith.mulf %16, %15 : vector<8x4xf32>
      %c0_13 = arith.constant 0 : index
      %c0_14 = arith.constant 0 : index
      %18 = vector.load %arg4[%c0_13, %c0_14] : memref<2x8xf32, #tpu.memory_space<vmem>>, vector<2x8xf32>
      %cst_15 = arith.constant dense<0.000000e+00> : vector<2x4xf32>
      %19 = tpu.matmul %18, %17, %cst_15 {dimension_numbers = #tpu.dot_dimension_numbers<[1], [0], [0], [1], [0, 0, 1, 1], [], []>} : vector<2x8xf32>, vector<8x4xf32>, vector<2x4xf32> -> vector<2x4xf32>
      %c0_16 = arith.constant 0 : index
      %c0_17 = arith.constant 0 : index
      %20 = vector.load %arg5[%c0_16, %c0_17] : memref<1x4xf32, #tpu.memory_space<vmem>>, vector<1x4xf32>
      %21 = vector.broadcast %20 : vector<1x4xf32> to vector<2x4xf32>
      %22 = arith.addf %19, %21 : vector<2x4xf32>
      %23 = arith.negf %22 : vector<2x4xf32>
      %24 = math.exp %23 : vector<2x4xf32>
      %cst_18 = arith.constant 1.000000e+00 : f32
      %25 = vector.broadcast %cst_18 : f32 to vector<2x4xf32>
      %26 = arith.addf %25, %24 : vector<2x4xf32>
      %27 = arith.divf %25, %26 : vector<2x4xf32>
      %c0_19 = arith.constant 0 : index
      %c0_20 = arith.constant 0 : index
      %28 = vector.load %arg6[%c0_19, %c0_20] : memref<2x4xf32, #tpu.memory_space<vmem>>, vector<2x4xf32>
      tpu.vector_store %arg6[%c0_19, %c0_20], %27 {strides = array<i32>} : memref<2x4xf32, #tpu.memory_space<vmem>>, vector<2x4xf32>,
    } else {
    }
    return
  }
  func.func @transform_0(%arg0: i32, %arg1: i32) -> (i32, i32) {
    %c0_i32 = arith.constant 0 : i32
    return %arg0, %arg1 : i32, i32
  }
  func.func @transform_1(%arg0: i32, %arg1: i32) -> (i32, i32) {
    %c0_i32 = arith.constant 0 : i32
    %c0_i32_0 = arith.constant 0 : i32
    %c0_i32_1 = arith.constant 0 : i32
    return %c0_i32, %c0_i32_0 : i32, i32
  }
  func.func @transform_2(%arg0: i32, %arg1: i32) -> (i32, i32) {
    %c0_i32 = arith.constant 0 : i32
    %c0_i32_0 = arith.constant 0 : i32
    %c0_i32_1 = arith.constant 0 : i32
    return %c0_i32, %c0_i32_0 : i32, i32
  }
  func.func @transform_3(%arg0: i32, %arg1: i32) -> (i32, i32) {
    %c0_i32 = arith.constant 0 : i32
    %c0_i32_0 = arith.constant 0 : i32
    %c0_i32_1 = arith.constant 0 : i32
    return %c0_i32, %c0_i32_0 : i32, i32
  }
  func.func @transform_4(%arg0: i32, %arg1: i32) -> (i32, i32) {
    %c0_i32 = arith.constant 0 : i32
    %c0_i32_0 = arith.constant 0 : i32
    return %arg0, %c0_i32 : i32, i32
  }
}

</mosaic_0001>

<bundles_post_ra>
// kernel: tpu_custom_call.1
= control target key start
LH: loop header
LB: loop body
LE: loop exit
PB: predicated region body
PF: predicated region fallthrough
CT: control target
= control target key end

     0   :  { %9 = vsyncpa [#allocation4], 0  ;;  %s271_s0 = inlined_call_operand.hbm [shape: f32[8,256], index: 0, kind: input, shape index: {}]   ;;  %s272_s1 = inlined_call_operand.vmem [shape: f32[8,4], index: 1, kind: input, shape index: {}]   ;;  %s273_s2 = inlined_call_operand.vmem [shape: f32[2,8], index: 2, kind: input, shape index: {}]   ;;  %s274_s3 = inlined_call_operand.vmem [shape: f32[1,4], index: 3, kind: input, shape index: {}]   ;;  %s275_s4 = inlined_call_operand.hbm [shape: f32[2,4], index: 4, kind: output, shape index: {}]  }
   0x1   :  { %10 = vsyncpa [#allocation5], 0  ;;  %s226_s15 = smov [#allocation3]  }
   0x2   :  { %s17_s16 = sshll.u32 %s226_s15, 4  ;;  %s18_s16 = int_to_ptr.vmem [resolvable:$true] %s17_s16 }
   0x3   :  { %s190_s17 = scalar_lea.vmem %s18_s16, 256  ;;  %p195_p1 = scmp.lt.s32.totalorder %s18_s16, %s18_s16 }
   0x4   :  { %p191_p0 = scmp.ne.s32.totalorder %s18_s16, %s190_s17  ;;  %p196_p2 = scmp.lt.s32.totalorder %s190_s17, %s190_s17 }
   0x6   :  { %p197_p3 = por %p196_p2, %p195_p1 }
   0x8   :  { %p198_p4 = pnand %p197_p3, %p191_p0 }
   0xa   :  { %201 = shalt.err (!%p198_p4)
}
   0xb   :  { %20 = dma.hbm_to_vmem [thread:$0]  %s271_s0, 256, %s18_s16, [#allocation4]  }
   0xc   :  { %222 = dma.done.wait [#allocation4], 256  }
   0xd   :  { %223 = vsyncadd [#allocation4], 4294967040  ;;  %vm34_vm0 = vcmask 7168   ;;  %v227_v0 = vmov 0.0   ;;  %v36_v1 = vld [vmem:[#allocation3] sm:$0xff]  ;;  %v37_v2 = vld [vmem:[#allocation3 + $0x8] sm:$0xff] }
   0xe   :  { %35 = vst.msk [vmem:[#allocation2] sm:$0xff] %vm34_vm0, %v227_v0  ;;  %167 = vmatprep.subr.mxu0 %v227_v0  ;;  %v39_v3 = vadd.f32 %v37_v2, %v36_v1  ;;  %v228_v4 = vmov 0   ;;  %vm229_vm1 = vmmov 0   ;;  %v50_v10 = vld [vmem:[%s272_s1] sm:$0xff]  ;;  %vm65_vm2 = vcmask 64512   ;;  %s230_s1 = smov [#allocation6]  }
   0xf   :  { %177 = vset.pattern.permute.xlu0 %v228_v4  ;;  %169 = vmatprep.mubr.msk.f32.mxu0 %vm229_vm1, %v227_v0  ;;  %v57_v13 = vld [vmem:[%s273_s2] sm:$0x3]  ;;  %s153_s25 = sshll.u32 %s230_s1, 4  ;;  %vm145_vm3 = vcmask 25600   ;;  %s154_s25 = int_to_ptr.vmem [resolvable:$true] %s153_s25 }
  0x10   :  { %40 = vadd.xlane.f32.xlu0 %v39_v3  ;;  %v162_v14 = vld [vmem:[%s274_s3] ss:$0 sm:$0xff]  ;;  %s202_s2 = scalar_lea.vmem %s154_s25, 32  ;;  %p207_p6 = scmp.lt.s32.totalorder %s154_s25, %s154_s25 }
  0x11   :  { %p203_p5 = scmp.ne.s32.totalorder %s154_s25, %s202_s2  ;;  %p208_p7 = scmp.lt.s32.totalorder %s202_s2, %s202_s2 }
  0x13   :  { %p209_p8 = por %p208_p7, %p207_p6 }
  0x15   :  { %v38_v5 = vld [vmem:[#allocation2] sm:$0xff]  ;;  %p210_p9 = pnand %p209_p8, %p203_p5 }
  0x99   :  { %v41_v6 = vpop.xlane.xlu0 %40 }
  0x9a   :  { %v42_v7 = vadd.f32 %v41_v6, %v38_v5 }
  0x9c   :  { %44 = vst.msk [vmem:[#allocation2] sm:$0xff] %vm34_vm0, %v42_v7 }
  0xa3   :  { %v48_v8 = vld [vmem:[#allocation2] sm:$0xff] }
  0xa4   :  { %v49_v9 = vmul.f32 0.00390625, %v48_v8 }
  0xa6   :  { %53 = vperm.xlu0 %177, %v49_v9  }
 0x121   :  { %v54_v11 = vpop.permute.xlu0 %53 }
 0x122   :  { %v56_v12 = vmul.f32 %v54_v11, %v50_v10 }
 0x124   :  { %168 = vmatpush3.msra.mxu0 %v56_v12 }
 0x125   :  { %170 = vmatmul.mubr.msk.f32.vlgmr.msra.gmra.mxu0 %vm65_vm2, %v57_v13 }
 0x1e5   :  { %v135_v15 = vpop.f32.mrf.mxu0 }
 0x1e6   :  { %v136_v16 = vadd.f32 %v162_v14, %v135_v15 }
 0x1e7   :  { %v171_v17 = vpop.f32.mrf.mxu0 }
 0x1e8   :  { %v164_v18 = vmul.f32 -1.442695, %v136_v16 }
 0x1ea   :  { %178 = vpow2.f32 %v164_v18 }
 0x1f7   :  { %v179_v19 = vpop.eup %178 }
 0x1f8   :  { %v142_v20 = vadd.f32 1.0, %v179_v19 }
 0x1fa   :  { %180 = vrcp.f32 %v142_v20 }
 0x207   :  { %v181_v21 = vpop.eup %180 }
 0x208   :  { %146 = vst.msk [vmem:[#allocation6] sm:$0x3] %vm145_vm3, %v181_v21 }
 0x209   :  { %213 = shalt.err (!%p210_p9)
}
 0x20a   :  { %156 = dma.vmem_to_hbm [thread:$0]  %s154_s25, 32, %s275_s4, [#allocation5]  }
 0x20b   :  { %224 = dma.done.wait [#allocation5], 32  }
 0x20c   :  { %225 = vsyncadd [#allocation5], 4294967264 }
 0x20d   :  { %160 = vsyncpa [#allocation4], 1 }
 0x20e   :  { %161 = vsyncpa [#allocation5], 1 }

</bundles_post_ra>
